<compile_context>
chip_gen: v7x
topology: tpu7x:2x2x1
jax: 0.10.0
libtpu: 0.0.40
codegen_flags: <defaults>
</compile_context>

<pallas_src>
import jax
import jax.numpy as jnp
import numpy as np
from jax import lax
from jax.experimental import pallas as pl
from jax.experimental.pallas import tpu as pltpu


def _round_up(x, m):
    return ((x + m - 1) // m) * m


def _valuenet_kernel(x_ref, w1_ref, b1_ref, w2_ref, b2_ref, w3_ref, b3_ref,
                     out_ref):
    # x_ref: (TM, in_dim) f32 tile of obs, natural row-major layout from HBM.
    x = x_ref[...].astype(jnp.bfloat16)
    # Layer 1: contract the feature axis of both operands (== W1 @ x.T), so the
    # (64, TM) result puts the batch dim on the 128-wide lane axis.
    h1 = lax.dot_general(w1_ref[...], x,
                         dimension_numbers=(((1,), (1,)), ((), ())),
                         preferred_element_type=jnp.float32)
    h1 = jnp.maximum(h1 + b1_ref[...], 0.0)              # bias + ReLU in f32 (VPU)
    # Layer 2: (64, 64) @ (64, TM) -> (64, TM) on the MXU, f32 accumulate.
    h2 = jnp.dot(w2_ref[...], h1.astype(w2_ref.dtype),
                 preferred_element_type=jnp.float32)
    h2 = jnp.maximum(h2 + b2_ref[...], 0.0)
    # Layer 3: 64 -> out_dim projection.
    out_dim = out_ref.shape[0]
    b3 = b3_ref[...]                                      # (out_dim, 1) f32
    if out_dim == 1:
        # Keep the 64x1 projection off the MXU: VPU broadcast multiply (w3
        # column broadcast across lanes) + sublane (XLU) reduce.  The result is
        # already a lane-dense (1, TM) row -> dense vst writeback.
        w3 = w3_ref[...].astype(jnp.float32)              # (64, 1)
        out = jnp.sum(h2 * w3, axis=0, keepdims=True) + b3
    else:
        # General out_dim: contract the feature axis on the MXU.
        out = lax.dot_general(w3_ref[...], h2.astype(w3_ref.dtype),
                              dimension_numbers=(((0,), (0,)), ((), ())),
                              preferred_element_type=jnp.float32) + b3
    out_ref[...] = out.astype(out_ref.dtype)


def _valuenet_xla(obs, params):
    """Plain fused-XLA path (exact f32 PyTorch math). Also the reference."""
    h1 = jnp.maximum(obs @ params["w1"].T + params["b1"][:, 0], 0.0)
    h2 = jnp.maximum(h1 @ params["w2"].T + params["b2"][:, 0], 0.0)
    return h2 @ params["w3"] + params["b3"][:, 0]


def valuenet_forward(obs, params, *, tile_m=8192, min_pallas_batch=1024,
                     vmem_limit_bytes=None):
    """ValueNet forward.

    obs: (B, in_dim) float32.
    params dict:
      w1: (64, in_dim), w2: (64, 64)   -- PyTorch (out, in) orientation
      w3: (64, out_dim)                -- stored as a column (transposed)
      b1, b2: (64, 1), b3: (out_dim, 1)
    Returns (B, out_dim) float32.
    """
    w1, b1 = params["w1"], params["b1"]
    w2, b2 = params["w2"], params["b2"]
    w3, b3 = params["w3"], params["b3"]

    B, in_dim = obs.shape
    hidden = w1.shape[0]
    out_dim = w3.shape[1]

    obs_f = obs.astype(jnp.float32)
    if B < min_pallas_batch:
        # Tiny rollout/eval batches: XLA's fusion beats the pallas_call launch.
        return _valuenet_xla(obs_f, params)

    # Batch tile: multiple of 128, at most tile_m, and at most ceil(B/2)
    # (rounded up to 128) so the grid has >= 2 steps -> both v7x TensorCores
    # get a share of the batch.  Harmless on single-TC v5e/v6e.
    tm = max(128, min(_round_up(tile_m, 128), _round_up(pl.cdiv(B, 2), 128)))
    grid = (pl.cdiv(B, tm),)

    # Only the tiny weights get a one-time bf16 cast; obs goes in untouched.
    w1b, w2b, w3b = (w.astype(jnp.bfloat16) for w in (w1, w2, w3))
    b1f, b2f, b3f = (b.astype(jnp.float32) for b in (b1, b2, b3))

    const = lambda i: (0, 0)   # weights/biases: DMA'd once, VMEM-resident
    flops = 2 * B * hidden * (in_dim + hidden + out_dim)
    bytes_accessed = (B * in_dim * 4 + B * out_dim * 4
                      + (w1.size + w2.size + w3.size) * 2
                      + (b1.size + b2.size + b3.size) * 4)

    out_t = pl.pallas_call(
        _valuenet_kernel,
        out_shape=jax.ShapeDtypeStruct((out_dim, B), jnp.float32),
        grid=grid,
        in_specs=[
            pl.BlockSpec((tm, in_dim), lambda i: (i, 0)),   # obs tile walks batch rows
            pl.BlockSpec((hidden, in_dim), const),
            pl.BlockSpec((hidden, 1), const),
            pl.BlockSpec((hidden, hidden), const),
            pl.BlockSpec((hidden, 1), const),
            pl.BlockSpec((hidden, out_dim), const),
            pl.BlockSpec((out_dim, 1), const),
        ],
        out_specs=pl.BlockSpec((out_dim, tm), lambda i: (0, i)),
        compiler_params=pltpu.CompilerParams(
            dimension_semantics=("parallel",),               # shard batch over TCs (v7x)
            vmem_limit_bytes=vmem_limit_bytes),
        cost_estimate=pl.CostEstimate(flops=int(flops), transcendentals=0,
                                      bytes_accessed=int(bytes_accessed)),
    )(obs_f, w1b, b1f, w2b, b2f, w3b, b3f)

    # (out_dim, B) -> (B, out_dim); for out_dim == 1 this is just a reshape.
    return out_t.T


def _orthogonal(key, shape, std):
    """Orthogonal init (matches torch.nn.init.orthogonal_ semantics)."""
    rows, cols = shape
    n = max(rows, cols)
    a = jax.random.normal(key, (n, n), dtype=jnp.float32)
    q, r = jnp.linalg.qr(a)
    sign = jnp.sign(jnp.diag(r))
    sign = jnp.where(sign == 0, 1.0, sign)  # guard zero diagonal entries
    q = q * sign
    return std * q[:rows, :cols]


def init_valuenet_params(key, in_dim, out_dim, hidden=64):
    """Orthogonal-initialized params (biases = 0), in kernel-friendly layout."""
    k1, k2, k3 = jax.random.split(key, 3)
    std = float(np.sqrt(2.0))
    return {
        "w1": _orthogonal(k1, (hidden, in_dim), std),        # (64, in_dim)
        "b1": jnp.zeros((hidden, 1), jnp.float32),
        "w2": _orthogonal(k2, (hidden, hidden), std),        # (64, 64)
        "b2": jnp.zeros((hidden, 1), jnp.float32),
        "w3": _orthogonal(k3, (out_dim, hidden), 1.0).T,     # (64, out_dim)
        "b3": jnp.zeros((out_dim, 1), jnp.float32),
    }


if __name__ == "__main__":
    key = jax.random.PRNGKey(0)
    k_obs, k_params = jax.random.split(key)

    # Small but grid-exercising shapes: 300 rows.
    #  * tile_m=128  -> tm=128, grid=(3,) incl. a 44-row ragged tail tile.
    #  * default     -> tm=256, grid=(2,)  incl. a 44-row ragged tail tile.
    batch, in_dim, out_dim = 300, 12, 1
    obs = jax.random.normal(k_obs, (batch, in_dim), dtype=jnp.float32)
    params = init_valuenet_params(k_params, in_dim, out_dim)

    # Force the Pallas path at this small test batch (min_pallas_batch=0).
    out_multi = jax.block_until_ready(
        valuenet_forward(obs, params, tile_m=128, min_pallas_batch=0))
    out_default = jax.block_until_ready(
        valuenet_forward(obs, params, min_pallas_batch=0))
    # Default dispatch at this batch size takes the fused-XLA small-batch path.
    out_xla = jax.block_until_ready(valuenet_forward(obs, params))

    assert out_multi.shape == (batch, out_dim)
    assert out_default.shape == (batch, out_dim)
    assert out_xla.shape == (batch, out_dim)

    # True f32 PyTorch-semantics reference: asserts the deliberate bf16-operand
    # approximation stays within ~1e-2 level error.
    ref = np.asarray(_valuenet_xla(obs, params))
    np.testing.assert_allclose(np.asarray(out_multi), ref, rtol=5e-2, atol=5e-2)
    np.testing.assert_allclose(np.asarray(out_default), ref, rtol=5e-2, atol=5e-2)
    np.testing.assert_allclose(np.asarray(out_xla), ref, rtol=1e-6, atol=1e-6)

    print("KERNEL_OK")
</pallas_src>

<mosaic_0001>
module attributes {stable_mosaic.version = 11 : i64} {
  func.func @_valuenet_kernel(%arg0: i32, %arg1: memref<128x12xf32, #tpu.memory_space<vmem>>, %arg2: memref<64x12xbf16, #tpu.memory_space<vmem>>, %arg3: memref<64x1xf32, #tpu.memory_space<vmem>>, %arg4: memref<64x64xbf16, #tpu.memory_space<vmem>>, %arg5: memref<64x1xf32, #tpu.memory_space<vmem>>, %arg6: memref<64x1xbf16, #tpu.memory_space<vmem>>, %arg7: memref<1x1xf32, #tpu.memory_space<vmem>>, %arg8: memref<1x128xf32, #tpu.memory_space<vmem>>) attributes {dimension_semantics = [#tpu.dimension_semantics<parallel>], iteration_bounds = array<i64: 3>, scalar_prefetch = 0 : i64, scratch_operands = 0 : i64, tpu.core_type = #tpu.core_type<tc>, window_params = [{transform_indices = @transform_0, window_bounds = array<i64: 128, 12>}, {pipeline_mode = #tpu.pipeline_mode<synchronous>, transform_indices = @transform_1, window_bounds = array<i64: 64, 12>}, {pipeline_mode = #tpu.pipeline_mode<synchronous>, transform_indices = @transform_2, window_bounds = array<i64: 64, 1>}, {pipeline_mode = #tpu.pipeline_mode<synchronous>, transform_indices = @transform_3, window_bounds = array<i64: 64, 64>}, {pipeline_mode = #tpu.pipeline_mode<synchronous>, transform_indices = @transform_4, window_bounds = array<i64: 64, 1>}, {pipeline_mode = #tpu.pipeline_mode<synchronous>, transform_indices = @transform_5, window_bounds = array<i64: 64, 1>}, {pipeline_mode = #tpu.pipeline_mode<synchronous>, transform_indices = @transform_6, window_bounds = array<i64: 1, 1>}, {transform_indices = @transform_7, window_bounds = array<i64: 1, 128>}]} {
    %c0 = arith.constant 0 : index
    %c0_0 = arith.constant 0 : index
    %0 = vector.load %arg1[%c0, %c0_0] : memref<128x12xf32, #tpu.memory_space<vmem>>, vector<128x12xf32>
    %1 = arith.truncf %0 : vector<128x12xf32> to vector<128x12xbf16>
    %c0_1 = arith.constant 0 : index
    %c0_2 = arith.constant 0 : index
    %2 = vector.load %arg2[%c0_1, %c0_2] : memref<64x12xbf16, #tpu.memory_space<vmem>>, vector<64x12xbf16>
    %cst = arith.constant dense<0.000000e+00> : vector<64x128xf32>
    %3 = tpu.matmul %2, %1, %cst {dimension_numbers = #tpu.dot_dimension_numbers<[1], [1], [0], [0], [0, 0, 1, 0], [], []>} : vector<64x12xbf16>, vector<128x12xbf16>, vector<64x128xf32> -> vector<64x128xf32>
    %c0_3 = arith.constant 0 : index
    %c0_4 = arith.constant 0 : index
    %4 = vector.load %arg3[%c0_3, %c0_4] : memref<64x1xf32, #tpu.memory_space<vmem>>, vector<64x1xf32>
    %5 = vector.broadcast %4 : vector<64x1xf32> to vector<64x128xf32>
    %6 = arith.addf %3, %5 : vector<64x128xf32>
    %cst_5 = arith.constant 0.000000e+00 : f32
    %7 = vector.broadcast %cst_5 : f32 to vector<64x128xf32>
    %8 = arith.maximumf %6, %7 : vector<64x128xf32>
    %c0_6 = arith.constant 0 : index
    %c0_7 = arith.constant 0 : index
    %9 = vector.load %arg4[%c0_6, %c0_7] : memref<64x64xbf16, #tpu.memory_space<vmem>>, vector<64x64xbf16>
    %10 = arith.truncf %8 : vector<64x128xf32> to vector<64x128xbf16>
    %cst_8 = arith.constant dense<0.000000e+00> : vector<64x128xf32>
    %11 = tpu.matmul %9, %10, %cst_8 {dimension_numbers = #tpu.dot_dimension_numbers<[1], [0], [0], [1], [0, 0, 1, 1], [], []>} : vector<64x64xbf16>, vector<64x128xbf16>, vector<64x128xf32> -> vector<64x128xf32>
    %c0_9 = arith.constant 0 : index
    %c0_10 = arith.constant 0 : index
    %12 = vector.load %arg5[%c0_9, %c0_10] : memref<64x1xf32, #tpu.memory_space<vmem>>, vector<64x1xf32>
    %13 = vector.broadcast %12 : vector<64x1xf32> to vector<64x128xf32>
    %14 = arith.addf %11, %13 : vector<64x128xf32>
    %cst_11 = arith.constant 0.000000e+00 : f32
    %15 = vector.broadcast %cst_11 : f32 to vector<64x128xf32>
    %16 = arith.maximumf %14, %15 : vector<64x128xf32>
    %c0_12 = arith.constant 0 : index
    %c0_13 = arith.constant 0 : index
    %17 = vector.load %arg7[%c0_12, %c0_13] : memref<1x1xf32, #tpu.memory_space<vmem>>, vector<1x1xf32>
    %c0_14 = arith.constant 0 : index
    %c0_15 = arith.constant 0 : index
    %18 = vector.load %arg6[%c0_14, %c0_15] : memref<64x1xbf16, #tpu.memory_space<vmem>>, vector<64x1xbf16>
    %19 = arith.extf %18 : vector<64x1xbf16> to vector<64x1xf32>
    %20 = vector.broadcast %19 : vector<64x1xf32> to vector<64x128xf32>
    %21 = arith.mulf %16, %20 : vector<64x128xf32>
    %cst_16 = arith.constant dense<0.000000e+00> : vector<128xf32>
    %22 = vector.multi_reduction <add>, %21, %cst_16 [0] : vector<64x128xf32> to vector<128xf32>
    %23 = vector.shape_cast %22 : vector<128xf32> to vector<1x128xf32>
    %24 = vector.broadcast %17 : vector<1x1xf32> to vector<1x128xf32>
    %25 = arith.addf %23, %24 : vector<1x128xf32>
    %c0_17 = arith.constant 0 : index
    %c0_18 = arith.constant 0 : index
    %26 = vector.load %arg8[%c0_17, %c0_18] : memref<1x128xf32, #tpu.memory_space<vmem>>, vector<1x128xf32>
    tpu.vector_store %arg8[%c0_17, %c0_18], %25 {strides = array<i32>} : memref<1x128xf32, #tpu.memory_space<vmem>>, vector<1x128xf32>,
    return
  }
  func.func @transform_0(%arg0: i32) -> (i32, i32) {
    %c0_i32 = arith.constant 0 : i32
    %c0_i32_0 = arith.constant 0 : i32
    return %arg0, %c0_i32 : i32, i32
  }
  func.func @transform_1(%arg0: i32) -> (i32, i32) {
    %c0_i32 = arith.constant 0 : i32
    %c0_i32_0 = arith.constant 0 : i32
    %c0_i32_1 = arith.constant 0 : i32
    return %c0_i32, %c0_i32_0 : i32, i32
  }
  func.func @transform_2(%arg0: i32) -> (i32, i32) {
    %c0_i32 = arith.constant 0 : i32
    %c0_i32_0 = arith.constant 0 : i32
    %c0_i32_1 = arith.constant 0 : i32
    return %c0_i32, %c0_i32_0 : i32, i32
  }
  func.func @transform_3(%arg0: i32) -> (i32, i32) {
    %c0_i32 = arith.constant 0 : i32
    %c0_i32_0 = arith.constant 0 : i32
    %c0_i32_1 = arith.constant 0 : i32
    return %c0_i32, %c0_i32_0 : i32, i32
  }
  func.func @transform_4(%arg0: i32) -> (i32, i32) {
    %c0_i32 = arith.constant 0 : i32
    %c0_i32_0 = arith.constant 0 : i32
    %c0_i32_1 = arith.constant 0 : i32
    return %c0_i32, %c0_i32_0 : i32, i32
  }
  func.func @transform_5(%arg0: i32) -> (i32, i32) {
    %c0_i32 = arith.constant 0 : i32
    %c0_i32_0 = arith.constant 0 : i32
    %c0_i32_1 = arith.constant 0 : i32
    return %c0_i32, %c0_i32_0 : i32, i32
  }
  func.func @transform_6(%arg0: i32) -> (i32, i32) {
    %c0_i32 = arith.constant 0 : i32
    %c0_i32_0 = arith.constant 0 : i32
    %c0_i32_1 = arith.constant 0 : i32
    return %c0_i32, %c0_i32_0 : i32, i32
  }
  func.func @transform_7(%arg0: i32) -> (i32, i32) {
    %c0_i32 = arith.constant 0 : i32
    %c0_i32_0 = arith.constant 0 : i32
    return %c0_i32, %arg0 : i32, i32
  }
}

</mosaic_0001>

<bundles_post_ra>
// kernel: tpu_custom_call.1
= control target key start
LH: loop header
LB: loop body
LE: loop exit
PB: predicated region body
PF: predicated region fallthrough
CT: control target
= control target key end

     0   :  { %s1340_s0 = inlined_call_operand.vmem [shape: f32[300,12], index: 0, kind: input, shape index: {}]   ;;  %s1341_s1 = inlined_call_operand.vmem [shape: bf16[64,12], index: 1, kind: input, shape index: {}]   ;;  %s1342_s2 = inlined_call_operand.vmem [shape: f32[64,1], index: 2, kind: input, shape index: {}]   ;;  %s1343_s3 = inlined_call_operand.vmem [shape: bf16[64,64], index: 3, kind: input, shape index: {}]   ;;  %s1344_s4 = inlined_call_operand.vmem [shape: f32[64,1], index: 4, kind: input, shape index: {}]   ;;  %s1345_s5 = inlined_call_operand.vmem [shape: bf16[64,1], index: 5, kind: input, shape index: {}]   ;;  %s1346_s6 = inlined_call_operand.<no memory space> [shape: f32[1,1], index: 6, kind: input, shape index: {}]   ;;  %s1347_s7 = inlined_call_operand.hbm [shape: f32[1,300], index: 7, kind: output, shape index: {}]  }
   0x1   :  { %v12_v0 = vstv %s1346_s6 }
   0x2   :  { %13 = vst [vmem:[#allocation2] sm:$0x1] %v12_v0 }
   0x3   :  { %14 = vsyncpa [#allocation4], 0 }
   0x4   :  { %16 = vsyncpa [#allocation4 + $0x1], 0  ;;  %s1115_s26 = smov 0   ;;  %s1117_s27 = smov 0  }
   0x5   :  { %s1119_s28 = smov 0   ;;  %s1121_s29 = smov 0  }
   0x6 LB: > { %s833_s6 = sadd.s32 4294967295, %s1068_s29   ;;  %s834_s30 = sadd.s32 4294967294, %s1068_s29   ;;  %s1068_s29 = sphi %s1121_s29, %s1353_s29   ;;  %s1064_s28 = sphi %s1119_s28, %s1352_s28   ;;  %s1060_s27 = sphi %s1117_s27, %s1351_s27   ;;  %s1056_s26 = sphi %s1115_s26, %s1350_s26  }
   0x7   : > { %s1138_s8 = sadd.s32 1, %s1068_s29   ;;  %s181_s9 = sadd.s32 1, %s1064_s28 }
   0x8   : > { %s178_s10 = ssub.s32 %s1068_s29, %s1138_s8  ;;  %p191_p0 = scmp.ne.s32.totalorder %s1064_s28, %s1060_s27 }
   0x9   : > { %p179_p1 = scmp.eq.s32.totalorder %s178_s10, 0  ;;  %p192_p2 = scmp.eq.s32.totalorder %s833_s6, 2 }
   0xa   : > { %p197_p3 = scmp.ne.s32.totalorder %s1060_s27, %s1056_s26  ;;  %p198_p4 = scmp.eq.s32.totalorder %s834_s30, 2 }
   0xb   : > { %s1148_s11 = scalar_select %p179_p1, %s1064_s28, %s181_s9  }
   0xc   : > { %p1150_p5 = por %p192_p2, %p191_p0  ;;  %p1154_p6 = por %p198_p4, %p197_p3 }
   0xd   : > { %p837_p7 = scmp.ge.s32.totalorder %s1068_s29, 1  ;;  %p251_p8 = scmp.lt.s32.totalorder %s1068_s29, 4 }
   0xf   : > { %p252_p9 = pnand %p837_p7, %p251_p8 }
  0x10   : > { %s1160_s14 = sshll.u32 (!%p252_p9), %s833_s6, 4  ;;  %v998_v1 = vld [vmem:[%s1341_s1] sm:$0xff] (!%p252_p9)   ;;  %vm401_vm0 = vcmask (!%p252_p9), 97280   ;;  %v1070_v2 = vmov (!%p252_p9), 0   ;;  %v335_v4 = vld [vmem:[%s1342_s2 + $0x10] sm:$0xff] (!%p252_p9)  ;;  %v334_v5 = vld [vmem:[%s1342_s2 + $0x8] sm:$0xff] (!%p252_p9) }
  0x11   : > { %255 = sbr.rel (%p252_p9) target bundleno = 595 (0x253), region = 48  ;;  %p291_p10 = scmp.lt.s32.totalorder (!%p252_p9), %s1160_s14, 37  ;;  %914 = vmatprep.mubr.msk.bf16.mxu0 (!%p252_p9), %vm401_vm0, %v998_v1  ;;  %986 = vset.pattern.permute.xlu0 (!%p252_p9), %v1070_v2  ;;  %v333_v3 = vld [vmem:[%s1342_s2] sm:$0xff] (!%p252_p9)  ;;  %v336_v6 = vld [vmem:[%s1342_s2 + $0x18] sm:$0xff] (!%p252_p9)  ;;  %v338_v15 = vld [vmem:[%s1342_s2 + $0x28] sm:$0xff] (!%p252_p9)  ;;  %vm591_vm1 = vcmask (!%p252_p9), 523264  }
  0x12   : > { %987 = vset.pattern.permute.xlu1 (!%p252_p9), %v1070_v2  ;;  %343 = vperm.xlu0 (!%p252_p9), %986, %v333_v3   ;;  %v337_v14 = vld [vmem:[%s1342_s2 + $0x20] sm:$0xff] (!%p252_p9)  ;;  %v339_v18 = vld [vmem:[%s1342_s2 + $0x30] sm:$0xff] (!%p252_p9)  ;;  %v340_v19 = vld [vmem:[%s1342_s2 + $0x38] sm:$0xff] (!%p252_p9)  ;;  %s284_s18 = sand.u32 (!%p252_p9), 1, %s1060_s27   ;;  %s1071_s6 = smov (!%p252_p9), [#allocation3]  }
  0x13   : > { %353 = vperm.xlu1 (!%p252_p9), %987, %v335_v4   ;;  %v523_v22 = vld [vmem:[%s1344_s4] sm:$0xff] (!%p252_p9)  ;;  %v524_v24 = vld [vmem:[%s1344_s4 + $0x8] sm:$0xff] (!%p252_p9)  ;;  %v525_v29 = vld [vmem:[%s1344_s4 + $0x10] sm:$0xff] (!%p252_p9)  ;;  %s285_s19 = scalar_lea.vmem (!%p252_p9), [#allocation3], %s284_s18  ;;  %s767_s23 = scalar_lea.sflag (!%p252_p9), [#allocation4], %s284_s18 }
  0x14   : > { %v860_v23 = vld [vmem:[%s1345_s5] sm:$0xff] (!%p252_p9)   ;;  %v875_v30 = vld [vmem:[%s1345_s5 + $0x8] sm:$0xff] (!%p252_p9)   ;;  %v526_v31 = vld [vmem:[%s1344_s4 + $0x18] sm:$0xff] (!%p252_p9)  ;;  %s1010_s30 = sshll.u32 (!%p252_p9), %s1071_s6, 4  ;;  %s1011_s30 = int_to_ptr.vmem [resolvable:$false] %s1010_s30 }
  0x15   : > { %v861_v27 = vunpack.c.l.bf16 (!%p252_p9), %v860_v23  ;;  %v862_v28 = vunpack.c.h.bf16 (!%p252_p9), %v860_v23  ;;  %v865_v35 = vunpack.c.l.bf16 (!%p252_p9), %v875_v30  ;;  %v866_v36 = vunpack.c.h.bf16 (!%p252_p9), %v875_v30  ;;  %v527_v37 = vld [vmem:[%s1344_s4 + $0x20] sm:$0xff] (!%p252_p9)  ;;  %v528_v41 = vld [vmem:[%s1344_s4 + $0x28] sm:$0xff] (!%p252_p9)  ;;  %v876_v42 = vld [vmem:[%s1345_s5 + $0x10] sm:$0xff] (!%p252_p9)   ;;  %s1012_s9 = scalar_lea.vmem (!%p252_p9), %s1011_s30, 32 }
  0x16   : > { %348 = vperm.xlu0 (!%p252_p9), %986, %v334_v5   ;;  %v529_v45 = vld [vmem:[%s1344_s4 + $0x30] sm:$0xff] (!%p252_p9)  ;;  %v869_v46 = vunpack.c.l.bf16 (!%p252_p9), %v876_v42  ;;  %v530_v49 = vld [vmem:[%s1344_s4 + $0x38] sm:$0xff] (!%p252_p9)  ;;  %v870_v51 = vunpack.c.h.bf16 (!%p252_p9), %v876_v42  ;;  %v677_v58 = vld [vmem:[#allocation2] sm:$0x1] (!%p252_p9) }
  0x17   : > { %358 = vperm.xlu1 (!%p252_p9), %987, %v336_v6   ;;  %v988_v34 = vpack.i.bf16 (!%p252_p9), %v862_v28, %v861_v27  ;;  %v993_v40 = vpack.i.bf16 (!%p252_p9), %v866_v36, %v865_v35  ;;  %v877_v50 = vld [vmem:[%s1345_s5 + $0x18] sm:$0xff] (!%p252_p9)   ;;  %v999_v2 = vld [vmem:[%s1341_s1 + $0x8] sm:$0xff] (!%p252_p9)   ;;  %v1000_v3 = vld [vmem:[%s1341_s1 + $0x10] sm:$0xff] (!%p252_p9)  }
  0x18   : > { %s292_s17 = scalar_select %p291_p10, %s1160_s14, 37  ;;  %v873_v54 = vunpack.c.l.bf16 %v877_v50  ;;  %v874_v55 = vunpack.c.h.bf16 %v877_v50  ;;  %v1001_v4 = vld [vmem:[%s1341_s1 + $0x18] sm:$0xff]   ;;  %v1002_v5 = vld [vmem:[%s1343_s3] sm:$0xff]   ;;  %v1003_v42 = vld [vmem:[%s1343_s3 + $0x8] sm:$0xff]  }
  0x19   : > { %930 = vmatprep.mubr.msk.bf16.mxu1 %vm591_vm1, %v1002_v5 }
  0x1a   : > { %s839_s20 = sshll.u32 %s292_s17, 3  ;;  %363 = vperm.xlu0 %986, %v337_v14  }
  0x1b   : > { %s1177_s25 = scalar_lea.vmem %s1340_s0, %s839_s20  ;;  %368 = vperm.xlu1 %987, %v338_v15   ;;  %s779_s20 = sshll.u32 %s285_s19, 4  ;;  %s1300_s20 = int_to_ptr.vmem [resolvable:$true] %s779_s20 }
  0x1c   : > { %v301_v7 = vld [vmem:[%s1177_s25] sm:$0xff]  ;;  %v302_v8 = vld [vmem:[%s1177_s25 + $0x8] sm:$0xff]  ;;  %v303_v9 = vld [vmem:[%s1177_s25 + $0x10] sm:$0xff]  ;;  %s1006_s24 = scalar_lea.vmem %s1300_s20, 16  ;;  %p1013_p0 = scmp.lt.s32.totalorder %s1300_s20, %s1011_s30 }
  0x1d   : > { %v317_v10 = vpack.c.bf16 %v302_v8, %v301_v7  ;;  %v304_v11 = vld [vmem:[%s1177_s25 + $0x18] sm:$0xff]  ;;  %v305_v16 = vld [vmem:[%s1177_s25 + $0x20] sm:$0xff]  ;;  %v306_v17 = vld [vmem:[%s1177_s25 + $0x28] sm:$0xff]  ;;  %p1007_p11 = scmp.ne.s32.totalorder %s1300_s20, %s1006_s24  ;;  %p1014_p1 = scmp.lt.s32.totalorder %s1012_s9, %s1006_s24 }
  0x1e   : > { %v318_v12 = vpack.c.bf16 %v304_v11, %v303_v9  ;;  %v319_v21 = vpack.c.bf16 %v306_v17, %v305_v16  ;;  %373 = vperm.xlu0 %986, %v339_v18   ;;  %v307_v25 = vld [vmem:[%s1177_s25 + $0x30] sm:$0xff]  ;;  %v308_v26 = vld [vmem:[%s1177_s25 + $0x38] sm:$0xff]  ;;  %v309_v38 = vld [vmem:[%s1177_s25 + $0x40] sm:$0xff] }
  0x1f   : > { %938 = vmatprep.subr.msk.bf16.mxu0 %vm401_vm0, %v317_v10  ;;  %v415_v13 = vsel %vm401_vm0, %v317_v10, 0  ;;  %378 = vperm.xlu1 %987, %v340_v19   ;;  %v320_v33 = vpack.c.bf16 %v308_v26, %v307_v25  ;;  %v310_v39 = vld [vmem:[%s1177_s25 + $0x48] sm:$0xff]  ;;  %v311_v47 = vld [vmem:[%s1177_s25 + $0x50] sm:$0xff]  ;;  %v312_v48 = vld [vmem:[%s1177_s25 + $0x58] sm:$0xff]  ;;  %p1008_p12 = pnand %p1007_p11, %p1150_p5  ;;  %p1015_p2 = por %p1014_p1, %p1013_p0 }
  0x20   : > { %899 = vmatpush3.bf16.xpose.msra.mxu0 %v415_v13  ;;  %v418_v20 = vsel %vm401_vm0, %v318_v12, 0  ;;  %v421_v32 = vsel %vm401_vm0, %v319_v21, 0  ;;  %v321_v44 = vpack.c.bf16 %v310_v39, %v309_v38  ;;  %v322_v53 = vpack.c.bf16 %v312_v48, %v311_v47  ;;  %v313_v56 = vld [vmem:[%s1177_s25 + $0x60] sm:$0xff]  ;;  %v314_v57 = vld [vmem:[%s1177_s25 + $0x68] sm:$0xff]  ;;  %v315_v61 = vld [vmem:[%s1177_s25 + $0x70] sm:$0xff] }
  0x21   : > { %939 = vmatprep.subr.msk.bf16.mxu0 %vm401_vm0, %v318_v12  ;;  %v424_v43 = vsel %vm401_vm0, %v320_v33, 0  ;;  %v323_v60 = vpack.c.bf16 %v314_v57, %v313_v56  ;;  %v316_v62 = vld [vmem:[%s1177_s25 + $0x78] sm:$0xff]  ;;  %s1298_s25 = scalar_lea.hbm %s1347_s7, %s1160_s14  ;;  %p1009_p13 = pneg %p1008_p12 }
  0x22   : > { %533 = vperm.xlu0 %986, %v523_v22   ;;  %v427_v52 = vsel %vm401_vm0, %v321_v44, 0  ;;  %v430_v59 = vsel %vm401_vm0, %v322_v53, 0  ;;  %v324_v0 = vpack.c.bf16 %v316_v62, %v315_v61 }
  0x23   : > { %538 = vperm.xlu1 %987, %v524_v24   ;;  %v433_v63 = vsel %vm401_vm0, %v323_v60, 0  ;;  %p1016_p3 = pnand %p1015_p2, %p1009_p13 }
  0x24   : > { %v436_v1 = vsel %vm401_vm0, %v324_v0, 0 }
  0x26   : > { %543 = vperm.xlu0 %986, %v525_v29  }
  0x27   : > { %548 = vperm.xlu1 %987, %v526_v31  }
  0x28   : > { %901 = vmatpush3.bf16.xpose.msra.mxu0 %v418_v20 }
  0x29   : > { %940 = vmatprep.subr.msk.bf16.mxu0 %vm401_vm0, %v319_v21 }
  0x2a   : > { %989 = vperm.xlu0 %986, %v988_v34  }
  0x2b   : > { %553 = vperm.xlu1 %987, %v527_v37  }
  0x2e   : > { %994 = vperm.xlu0 %986, %v993_v40  }
  0x2f   : > { %558 = vperm.xlu1 %987, %v528_v41  }
  0x30   : > { %903 = vmatpush3.bf16.xpose.msra.mxu0 %v421_v32 }
  0x31   : > { %941 = vmatprep.subr.msk.bf16.mxu0 %vm401_vm0, %v320_v33 }
  0x32   : > { %563 = vperm.xlu0 %986, %v529_v45  }
  0x33   : > { %716 = vperm.xlu1 %987, %v869_v46  }
  0x36   : > { %568 = vperm.xlu0 %986, %v530_v49  }
  0x37   : > { %721 = vperm.xlu1 %987, %v870_v51  }
  0x38   : > { %905 = vmatpush3.bf16.xpose.msra.mxu0 %v424_v43  ;;  %v1004_v43 = vld [vmem:[%s1343_s3 + $0x10] sm:$0xff]  }
  0x39   : > { %942 = vmatprep.subr.msk.bf16.mxu0 %vm401_vm0, %v321_v44  ;;  %v1005_v44 = vld [vmem:[%s1343_s3 + $0x18] sm:$0xff]  }
  0x3a   : > { %726 = vperm.xlu0 %986, %v873_v54  }
  0x3b   : > { %731 = vperm.xlu1 %987, %v874_v55  }
  0x3e   : > { %757 = vperm.xlu0 %986, %v677_v58  }
  0x40   : > { %907 = vmatpush3.bf16.xpose.msra.mxu0 %v427_v52 }
  0x41   : > { %943 = vmatprep.subr.msk.bf16.mxu0 %vm401_vm0, %v322_v53 }
  0x48   : > { %909 = vmatpush3.bf16.xpose.msra.mxu0 %v430_v59 }
  0x49   : > { %944 = vmatprep.subr.msk.bf16.mxu0 %vm401_vm0, %v323_v60 }
  0x50   : > { %911 = vmatpush3.bf16.xpose.msra.mxu0 %v433_v63 }
  0x51   : > { %945 = vmatprep.subr.msk.bf16.mxu0 %vm401_vm0, %v324_v0 }
  0x58   : > { %913 = vmatpush3.bf16.xpose.msra.mxu0 %v436_v1 }
  0x5f   : > { %915 = vmatmul.mubr.msk.bf16.vlgmr.msra.gmra.mrb[0].mxu0 %vm401_vm0, %v999_v2 }
  0x60   : > { %918 = vmatprep.mubr.msk.bf16.mxu0 %vm401_vm0, %v1000_v3 }
  0x67   : > { %919 = vmatmul.mubr.msk.bf16.gmra.mrb[4].mxu0 %vm401_vm0, %v1001_v4 }
  0x91   : > { %v344_v6 = vpop.permute.xlu0 %343 }
  0x92   : > { %v354_v7 = vpop.permute.xlu1 %353 }
  0x95   : > { %v349_v8 = vpop.permute.xlu0 %348 }
  0x96   : > { %v359_v9 = vpop.permute.xlu1 %358 }
  0x99   : > { %v364_v13 = vpop.permute.xlu0 %363 }
  0x9a   : > { %v369_v18 = vpop.permute.xlu1 %368 }
  0x9d   : > { %v374_v25 = vpop.permute.xlu0 %373 }
  0x9e   : > { %v379_v30 = vpop.permute.xlu1 %378 }
  0xa1   : > { %v534_v45 = vpop.permute.xlu0 %533 }
  0xa2   : > { %v539_v46 = vpop.permute.xlu1 %538 }
  0xa5   : > { %v544_v47 = vpop.permute.xlu0 %543 }
  0xa6   : > { %v549_v48 = vpop.permute.xlu1 %548 }
  0xa9   : > { %v990_v49 = vpop.permute.xlu0 %989 }
  0xaa   : > { %v554_v50 = vpop.permute.xlu1 %553  ;;  %v992_v63 = vunpack.i.h.bf16 %v990_v49  ;;  %v991_v0 = vunpack.i.l.bf16 %v990_v49 }
  0xad   : > { %v995_v51 = vpop.permute.xlu0 %994 }
  0xae   : > { %v559_v53 = vpop.permute.xlu1 %558  ;;  %v996_v5 = vunpack.i.l.bf16 %v995_v51 }
  0xb1   : > { %v564_v62 = vpop.permute.xlu0 %563 }
  0xb2   : > { %v717_v3 = vpop.permute.xlu1 %716 }
 0x132   : > { %v916_v10 = vpop.f32.mrb[0].mxu0 }
 0x133   : > { %v481_v11 = vadd.f32 %v916_v10, %v354_v7  ;;  %v472_v12 = vpop.f32.mrb[1].mxu0 }
 0x134   : > { %v473_v14 = vadd.f32 %v472_v12, %v344_v6  ;;  %v917_v15 = vpop.f32.mrb[2].mxu0 }
 0x135   : > { %v484_v16 = vadd.f32 %v917_v15, %v359_v9  ;;  %v475_v17 = vpop.f32.mrb[3].mxu0  ;;  %v505_v20 = vmax.f32 %v481_v11, 0.0  ;;  %v997_v9 = vunpack.i.h.bf16 %v995_v51 }
 0x136   : > { %v476_v19 = vadd.f32 %v475_v17, %v349_v8  ;;  %v503_v22 = vmax.f32 %v473_v14, 0.0 }
 0x137   : > { %v506_v21 = vmax.f32 %v484_v16, 0.0  ;;  %v569_v16 = vpop.permute.xlu0 %568 }
 0x138   : > { %v504_v23 = vmax.f32 %v476_v19, 0.0 }
 0x139   : > { %v520_v24 = vpack.c.bf16 %v506_v21, %v505_v20 }
 0x13a   : > { %v920_v26 = vpop.f32.mrb[4].mxu0  ;;  %v519_v27 = vpack.c.bf16 %v504_v23, %v503_v22  ;;  %v722_v23 = vpop.permute.xlu1 %721 }
 0x13b   : > { %v497_v28 = vadd.f32 %v920_v26, %v374_v25  ;;  %v488_v29 = vpop.f32.mrb[5].mxu0 }
 0x13c   : > { %v489_v31 = vadd.f32 %v488_v29, %v364_v13  ;;  %v921_v32 = vpop.f32.mrb[6].mxu0  ;;  %922 = vmatprep.subr.bf16.mxu1 %v519_v27 }
 0x13d   : > { %v500_v33 = vadd.f32 %v921_v32, %v379_v30  ;;  %v491_v34 = vpop.f32.mrb[7].mxu0  ;;  %923 = vmatpush3.bf16.msra.mxu1 %v519_v27  ;;  %v509_v36 = vmax.f32 %v497_v28, 0.0 }
 0x13e   : > { %v492_v35 = vadd.f32 %v491_v34, %v369_v18  ;;  %924 = vmatprep.subr.bf16.mxu1 %v520_v24  ;;  %v507_v38 = vmax.f32 %v489_v31, 0.0  ;;  %v727_v31 = vpop.permute.xlu0 %726  ;;  %v732_v34 = vpop.permute.xlu1 %731 }
 0x13f   : > { %v510_v37 = vmax.f32 %v500_v33, 0.0 }
 0x140   : > { %v508_v39 = vmax.f32 %v492_v35, 0.0 }
 0x141   : > { %v522_v40 = vpack.c.bf16 %v510_v37, %v509_v36  ;;  %925 = vmatpush3.bf16.msra.mxu1 %v520_v24  ;;  %v760_v37 = vlaneseq }
 0x142   : > { %v521_v41 = vpack.c.bf16 %v508_v39, %v507_v38 }
 0x144   : > { %926 = vmatprep.subr.bf16.mxu1 %v521_v41 }
 0x145   : > { %927 = vmatpush3.bf16.msra.mxu1 %v521_v41 }
 0x146   : > { %928 = vmatprep.subr.bf16.mxu1 %v522_v40 }
 0x149   : > { %929 = vmatpush3.bf16.msra.mxu1 %v522_v40  ;;  %v761_v40 = vshrl.u32 %v760_v37, 7 }
 0x14c   : > { %931 = vmatmul.mubr.msk.bf16.vlgmr.msra.gmra.mrb[0].mxu1 %vm591_vm1, %v1003_v42 }
 0x14d   : > { %934 = vmatprep.mubr.msk.bf16.mxu1 %vm591_vm1, %v1004_v43  ;;  %v762_v43 = vsub.s32 0, %v761_v40 }
 0x154   : > { %935 = vmatmul.mubr.msk.bf16.gmra.mrb[4].mxu1 %vm591_vm1, %v1005_v44 }
 0x21f   : > { %v932_v52 = vpop.f32.mrb[0].mxu1 }
 0x220   : > { %v638_v54 = vpop.f32.mrb[1].mxu1  ;;  %v647_v55 = vadd.f32 %v932_v52, %v544_v47 }
 0x221   : > { %v639_v56 = vadd.f32 %v638_v54, %v534_v45  ;;  %v933_v57 = vpop.f32.mrb[2].mxu1  ;;  %v758_v45 = vpop.permute.xlu0 %757 }
 0x222   : > { %v650_v58 = vadd.f32 %v933_v57, %v549_v48  ;;  %v641_v59 = vpop.f32.mrb[3].mxu1  ;;  %v671_v1 = vmax.f32 %v647_v55, 0.0  ;;  %v763_v47 = vrot.slane %v758_v45, %v762_v43 }
 0x223   : > { %v669_v60 = vmax.f32 %v639_v56, 0.0  ;;  %v642_v61 = vadd.f32 %v641_v59, %v539_v46 }
 0x224   : > { %v672_v4 = vmax.f32 %v650_v58, 0.0  ;;  %v736_v11 = vmul.f32 %v996_v5, %v671_v1 }
 0x225   : > { %v670_v2 = vmax.f32 %v642_v61, 0.0  ;;  %v734_v6 = vmul.f32 %v991_v0, %v669_v60 }
 0x226   : > { %v737_v17 = vmul.f32 %v997_v9, %v672_v4 }
 0x227   : > { %v735_v7 = vmul.f32 %v992_v63, %v670_v2  ;;  %v936_v8 = vpop.f32.mrb[4].mxu1 }
 0x228   : > { %v654_v10 = vpop.f32.mrb[5].mxu1  ;;  %v663_v13 = vadd.f32 %v936_v8, %v564_v62 }
 0x229   : > { %v742_v12 = vadd.f32 %v735_v7, %v734_v6  ;;  %v655_v14 = vadd.f32 %v654_v10, %v554_v50  ;;  %v937_v15 = vpop.f32.mrb[6].mxu1 }
 0x22a   : > { %v657_v18 = vpop.f32.mrb[7].mxu1  ;;  %v666_v21 = vadd.f32 %v937_v15, %v569_v16  ;;  %v675_v24 = vmax.f32 %v663_v13, 0.0 }
 0x22b   : > { %v743_v19 = vadd.f32 %v742_v12, %v736_v11  ;;  %v673_v20 = vmax.f32 %v655_v14, 0.0  ;;  %v658_v22 = vadd.f32 %v657_v18, %v559_v53 }
 0x22c   : > { %v676_v29 = vmax.f32 %v666_v21, 0.0  ;;  %v740_v32 = vmul.f32 %v727_v31, %v675_v24 }
 0x22d   : > { %v738_v25 = vmul.f32 %v717_v3, %v673_v20  ;;  %v744_v26 = vadd.f32 %v743_v19, %v737_v17  ;;  %v674_v27 = vmax.f32 %v658_v22, 0.0 }
 0x22e   : > { %v741_v35 = vmul.f32 %v732_v34, %v676_v29 }
 0x22f   : > { %v745_v28 = vadd.f32 %v744_v26, %v738_v25  ;;  %v739_v30 = vmul.f32 %v722_v23, %v674_v27 }
 0x231   : > { %v746_v33 = vadd.f32 %v745_v28, %v739_v30 }
 0x233   : > { %v747_v36 = vadd.f32 %v746_v33, %v740_v32 }
 0x235   : > { %v748_v38 = vadd.f32 %v747_v36, %v741_v35 }
 0x237   : > { %v749_v39 = vrot.slane %v748_v38, 4 }
 0x239   : > { %v750_v41 = vadd.f32 %v749_v39, %v748_v38 }
 0x23b   : > { %v751_v42 = vrot.slane %v750_v41, 2 }
 0x23d   : > { %v752_v44 = vadd.f32 %v751_v42, %v750_v41 }
 0x23f   : > { %v753_v46 = vrot.slane %v752_v44, 1 }
 0x241   : > { %v754_v48 = vadd.f32 %v753_v46, %v752_v44 }
 0x243   : > { %v764_v49 = vadd.f32 %v763_v47, %v754_v48 }
 0x245   : > { %765 = vst [vmem:[%s285_s19] sm:$0x1] %v764_v49 }
 0x246   : > { %1019 = shalt.err (!%p1016_p3)
}
 0x247   : > { %s1020_s14 = scalar_lea.hbm %s1298_s25, 16  ;;  %s1024_s16 = scalar_lea.hbm %s1347_s7, 48 }
 0x248   : > { %p1021_p4 = scmp.ne.s32.totalorder %s1298_s25, %s1020_s14  ;;  %p1025_p9 = scmp.lt.u32.totalorder %s1298_s25, %s1347_s7 }
 0x249   : > { %p1026_p10 = scmp.lt.u32.totalorder %s1024_s16, %s1020_s14  ;;  %p1028_p12 = scmp.lt.u32.totalorder %s1020_s14, %s1298_s25 }
 0x24a   : > { %p1022_p7 = pnand %p1021_p4, %p1150_p5 }
 0x24b   : > { %p1027_p11 = por %p1026_p10, %p1025_p9 }
 0x24c   : > { %p1023_p8 = pneg %p1022_p7 }
 0x24d   : > { %p1029_p13 = por %p1028_p12, %p1027_p11 }
 0x24f   : > { %p1030_p0 = pnand %p1029_p13, %p1023_p8 }
 0x251   : > { %1033 = shalt.err (!%p1030_p0)
}
 0x252   : > { %946 = dma.vmem_to_hbm [thread:$0]  (%p1150_p5), %s1300_s20, 16, %s1298_s25, %s767_s23  }
 0x253 PF: > { %p952_p1 = scmp.ge.s32.totalorder %s1068_s29, 2  ;;  %s791_s19 = sand.u32 1, %s1056_s26  }
 0x254   : > { %s792_s21 = scalar_lea.sflag [#allocation4], %s791_s19 }
 0x255   : > { %p949_p2 = pnand %p952_p1, %p1154_p6 }
 0x257   : > { %1051 = dma.done.wait (!%p949_p2), %s792_s21, 16  }
 0x258   : > { %1053 = vsyncadd (!%p949_p2), %s792_s21, 4294967280  ;;  %p19_p3 = scmp.ge.s32.totalorder %s1138_s8, 5   ;;  %s1350_s26 = smov %s1060_s27 }
 0x259   : > { %s1351_s27 = smov %s1064_s28  ;;  %s1352_s28 = smov %s1148_s11 }
 0x25a   : > { %s1353_s29 = smov %s1138_s8  ;;  %21 = sbr.rel (!%p19_p3) target bundleno = 6 (0x6), region = 83 }
 0x261   :  { %796 = vsyncpa [#allocation4], 1 }
 0x262   :  { %798 = vsyncpa [#allocation4 + $0x1], 1 }

</bundles_post_ra>
